<compile_context>
chip_gen: v7x
topology: tpu7x:2x2x1
jax: 0.10.0
libtpu: 0.0.40
codegen_flags: <defaults>
</compile_context>

<pallas_src>
import functools

import jax
import jax.numpy as jnp
from jax.experimental import pallas as pl
from jax.experimental.pallas import tpu as pltpu


_TARGET_BLOCK_BYTES = 2 * 1024 * 1024       # ~1-2 MiB blocks: pipelining + roofline
_MIN_SPLIT_BLOCK_BYTES = 256 * 1024         # don't split below this (~0.35us/step overhead)
_MAX_SINGLE_PASS_ROW_BYTES = 2 * 1024 * 1024  # beyond this, tile N (two-pass fallback)


def _sublane_multiple(dtype):
    itemsize = jnp.dtype(dtype).itemsize
    if itemsize >= 4:
        return 8
    if itemsize == 2:
        return 16
    return 32


# ---------------------------------------------------------------------------
# Single-pass kernel: each block holds full rows (cb, N); reduce + normalize.
# ---------------------------------------------------------------------------
def _minmax_norm_kernel(x_ref, o_ref):
    x = x_ref[...]                                     # native dtype, no f32 copy
    mn = jnp.min(x, axis=-1, keepdims=True)            # exact selection
    mx = jnp.max(x, axis=-1, keepdims=True)
    mn32 = mn.astype(jnp.float32)
    scale32 = pl.reciprocal(mx.astype(jnp.float32) - mn32 + jnp.float32(1e-6),
                            approx=False)
    if jnp.dtype(x_ref.dtype) == jnp.dtype(jnp.bfloat16):
        # bf16 VALU path (v6e/v7x): only the (cb, 1) scale is f32.
        o_ref[...] = ((x - mn) * scale32.astype(x.dtype)).astype(o_ref.dtype)
    else:
        o_ref[...] = ((x.astype(jnp.float32) - mn32) * scale32).astype(o_ref.dtype)


# ---------------------------------------------------------------------------
# Two-pass fallback kernels (rows too large for one VMEM block).
# ---------------------------------------------------------------------------
def _minmax_reduce_kernel(x_ref, mn_ref, mx_ref, *, nt, n_total):
    nj = pl.program_id(1)

    @pl.when(nj == 0)
    def _init():
        mn_ref[...] = jnp.full(mn_ref.shape, jnp.inf, mn_ref.dtype)
        mx_ref[...] = jnp.full(mx_ref.shape, -jnp.inf, mx_ref.dtype)

    x = x_ref[...].astype(jnp.float32)
    if n_total % nt != 0:
        # Ragged last N tile: mask padded lanes out of the reduction.
        lane = jax.lax.broadcasted_iota(jnp.int32, x.shape, dimension=1) + nj * nt
        valid = lane < n_total
        x_mn = jnp.where(valid, x, jnp.inf)
        x_mx = jnp.where(valid, x, -jnp.inf)
    else:
        x_mn = x
        x_mx = x
    mn_ref[...] = jnp.minimum(mn_ref[...], jnp.min(x_mn, axis=-1, keepdims=True))
    mx_ref[...] = jnp.maximum(mx_ref[...], jnp.max(x_mx, axis=-1, keepdims=True))


def _apply_norm_kernel(x_ref, mn_ref, mx_ref, o_ref):
    mn = mn_ref[...]                                   # (cb, 1) f32
    mx = mx_ref[...]
    scale = pl.reciprocal(mx - mn + jnp.float32(1e-6), approx=False)
    if jnp.dtype(x_ref.dtype) == jnp.dtype(jnp.bfloat16):
        o_ref[...] = ((x_ref[...] - mn.astype(x_ref.dtype))
                      * scale.astype(x_ref.dtype)).astype(o_ref.dtype)
    else:
        o_ref[...] = ((x_ref[...].astype(jnp.float32) - mn) * scale).astype(o_ref.dtype)


# ---------------------------------------------------------------------------
# Block planning
# ---------------------------------------------------------------------------
def _pick_cb_single_pass(C, row_bytes, sub, target_block_bytes, min_split_block_bytes):
    cb = max(1, target_block_bytes // row_bytes)
    cb = min(cb, C)
    if cb >= sub:
        cb = (cb // sub) * sub                         # keep sublanes dense
    # Give the pipeline (and v7x's second TensorCore) several grid steps when
    # each block would still be big enough to amortize per-step overhead.
    for steps in (8, 4, 2):
        cap = (C // steps // sub) * sub
        if cap >= sub and cap * row_bytes >= min_split_block_bytes:
            cb = min(cb, cap)
            break
    return max(1, cb)


def _pick_two_pass_tiles(C, N, itemsize, sub, target_block_bytes):
    cb = min(C, sub)
    nt = max(1, target_block_bytes // (cb * itemsize))
    nt = max(128, (nt // 128) * 128)
    n_floor = (N // 128) * 128
    if n_floor >= 128:
        nt = min(nt, n_floor)
    return cb, nt


# ---------------------------------------------------------------------------
# Wrapper
# ---------------------------------------------------------------------------
def min_max_normalize(x, *, target_block_bytes=_TARGET_BLOCK_BYTES,
                      max_single_pass_row_bytes=_MAX_SINGLE_PASS_ROW_BYTES):
    """x: (C, H, W) -> (C, H, W), per-channel min-max normalized."""
    C, H, W = x.shape
    N = H * W
    itemsize = jnp.dtype(x.dtype).itemsize
    sub = _sublane_multiple(x.dtype)
    x2 = x.reshape(C, N)                               # lane-dense last dim
    row_bytes = N * itemsize

    if row_bytes <= max_single_pass_row_bytes or N <= 128:
        # ---- Single-pass path: full rows fit a ~1-2 MiB VMEM block. ----
        cb = _pick_cb_single_pass(C, row_bytes, sub, target_block_bytes,
                                  _MIN_SPLIT_BLOCK_BYTES)
        out = pl.pallas_call(
            _minmax_norm_kernel,
            out_shape=jax.ShapeDtypeStruct((C, N), x.dtype),
            grid_spec=pltpu.PrefetchScalarGridSpec(
                num_scalar_prefetch=0,
                grid=(pl.cdiv(C, cb),),
                in_specs=[pl.BlockSpec((cb, N), lambda c: (c, 0))],
                out_specs=pl.BlockSpec((cb, N), lambda c: (c, 0)),
            ),
            compiler_params=pltpu.CompilerParams(
                dimension_semantics=("parallel",),
            ),
        )(x2)
        return out.reshape(C, H, W)

    # ---- Two-pass fallback: tile the (huge) N axis. ----
    cb, nt = _pick_two_pass_tiles(C, N, itemsize, sub, target_block_bytes)
    grid = (pl.cdiv(C, cb), pl.cdiv(N, nt))

    mn, mx = pl.pallas_call(
        functools.partial(_minmax_reduce_kernel, nt=nt, n_total=N),
        out_shape=(jax.ShapeDtypeStruct((C, 1), jnp.float32),
                   jax.ShapeDtypeStruct((C, 1), jnp.float32)),
        grid_spec=pltpu.PrefetchScalarGridSpec(
            num_scalar_prefetch=0,
            grid=grid,
            in_specs=[pl.BlockSpec((cb, nt), lambda c, n: (c, n))],
            out_specs=(pl.BlockSpec((cb, 1), lambda c, n: (c, 0)),
                       pl.BlockSpec((cb, 1), lambda c, n: (c, 0))),
        ),
        compiler_params=pltpu.CompilerParams(
            dimension_semantics=("parallel", "arbitrary"),
        ),
    )(x2)

    out = pl.pallas_call(
        _apply_norm_kernel,
        out_shape=jax.ShapeDtypeStruct((C, N), x.dtype),
        grid_spec=pltpu.PrefetchScalarGridSpec(
            num_scalar_prefetch=0,
            grid=grid,
            in_specs=[pl.BlockSpec((cb, nt), lambda c, n: (c, n)),
                      pl.BlockSpec((cb, 1), lambda c, n: (c, 0)),
                      pl.BlockSpec((cb, 1), lambda c, n: (c, 0))],
            out_specs=pl.BlockSpec((cb, nt), lambda c, n: (c, n)),
        ),
        compiler_params=pltpu.CompilerParams(
            dimension_semantics=("parallel", "parallel"),
        ),
    )(x2, mn, mx)
    return out.reshape(C, H, W)


def _reference(x):
    x32 = x.astype(jnp.float32)
    mn = jnp.min(x32, axis=(1, 2), keepdims=True)
    mx = jnp.max(x32, axis=(1, 2), keepdims=True)
    return (x32 - mn) / (mx - mn + 1e-6)


if __name__ == "__main__":
    key = jax.random.PRNGKey(0)
    k0, k1, k2 = jax.random.split(key, 3)

    # Main check: small shape consistent with the module, (C=4, H=16, W=16).
    x = jax.random.uniform(k0, (4, 16, 16), dtype=jnp.float32,
                           minval=-3.0, maxval=5.0)
    out = jax.block_until_ready(min_max_normalize(x))
    ref = _reference(x)
    assert out.shape == ref.shape
    assert jnp.allclose(out, ref, atol=1e-5, rtol=1e-5)

    # Exercise the tiled two-pass fallback (forced with a tiny budget),
    # including a ragged N tile (N=200) and C=3 (not a sublane multiple).
    x3 = jax.random.uniform(k1, (3, 10, 20), dtype=jnp.float32,
                            minval=-2.0, maxval=7.0)
    out3 = jax.block_until_ready(
        min_max_normalize(x3, target_block_bytes=512,
                          max_single_pass_row_bytes=0))
    assert jnp.allclose(out3, _reference(x3), atol=1e-5, rtol=1e-5)

    # Exercise the bf16 narrow-VALU path (single pass).
    xb = jax.random.uniform(k2, (16, 8, 16), dtype=jnp.float32,
                            minval=-1.0, maxval=1.0).astype(jnp.bfloat16)
    outb = jax.block_until_ready(min_max_normalize(xb))
    assert jnp.allclose(outb.astype(jnp.float32), _reference(xb),
                        atol=2e-2, rtol=2e-2)

    print("KERNEL_OK")
</pallas_src>

<mosaic_0001>
module attributes {stable_mosaic.version = 11 : i64} {
  func.func @_minmax_norm_kernel(%arg0: i32, %arg1: memref<4x256xf32, #tpu.memory_space<vmem>>, %arg2: memref<4x256xf32, #tpu.memory_space<vmem>>) attributes {dimension_semantics = [#tpu.dimension_semantics<parallel>], iteration_bounds = array<i64: 1>, scalar_prefetch = 0 : i64, scratch_operands = 0 : i64, tpu.core_type = #tpu.core_type<tc>, window_params = [{transform_indices = @transform_0, window_bounds = array<i64: 4, 256>}, {transform_indices = @transform_1, window_bounds = array<i64: 4, 256>}]} {
    %c0 = arith.constant 0 : index
    %c0_0 = arith.constant 0 : index
    %0 = vector.load %arg1[%c0, %c0_0] : memref<4x256xf32, #tpu.memory_space<vmem>>, vector<4x256xf32>
    %cst = arith.constant dense<0x7F800000> : vector<4xf32>
    %1 = vector.multi_reduction <minimumf>, %0, %cst [1] : vector<4x256xf32> to vector<4xf32>
    %2 = vector.shape_cast %1 : vector<4xf32> to vector<4x1xf32>
    %cst_1 = arith.constant dense<0xFF800000> : vector<4xf32>
    %3 = vector.multi_reduction <maximumf>, %0, %cst_1 [1] : vector<4x256xf32> to vector<4xf32>
    %4 = vector.shape_cast %3 : vector<4xf32> to vector<4x1xf32>
    %5 = arith.subf %4, %2 : vector<4x1xf32>
    %cst_2 = arith.constant 9.99999997E-7 : f32
    %6 = vector.broadcast %cst_2 : f32 to vector<4x1xf32>
    %7 = arith.addf %5, %6 : vector<4x1xf32>
    %8 = tpu.reciprocal %7 : vector<4x1xf32> -> vector<4x1xf32>
    %9 = vector.broadcast %2 : vector<4x1xf32> to vector<4x256xf32>
    %10 = arith.subf %0, %9 : vector<4x256xf32>
    %11 = vector.broadcast %8 : vector<4x1xf32> to vector<4x256xf32>
    %12 = arith.mulf %10, %11 : vector<4x256xf32>
    %c0_3 = arith.constant 0 : index
    %c0_4 = arith.constant 0 : index
    %13 = vector.load %arg2[%c0_3, %c0_4] : memref<4x256xf32, #tpu.memory_space<vmem>>, vector<4x256xf32>
    tpu.vector_store %arg2[%c0_3, %c0_4], %12 {strides = array<i32>} : memref<4x256xf32, #tpu.memory_space<vmem>>, vector<4x256xf32>,
    return
  }
  func.func @transform_0(%arg0: i32) -> (i32, i32) {
    %c0_i32 = arith.constant 0 : i32
    %c0_i32_0 = arith.constant 0 : i32
    return %arg0, %c0_i32 : i32, i32
  }
  func.func @transform_1(%arg0: i32) -> (i32, i32) {
    %c0_i32 = arith.constant 0 : i32
    %c0_i32_0 = arith.constant 0 : i32
    return %arg0, %c0_i32 : i32, i32
  }
}

</mosaic_0001>

<bundles_post_ra>
// kernel: tpu_custom_call.1
= control target key start
LH: loop header
LB: loop body
LE: loop exit
PB: predicated region body
PF: predicated region fallthrough
CT: control target
= control target key end

     0   :  { %6 = vsyncpa [#allocation3], 0  ;;  %s166_s0 = inlined_call_operand.hbm [shape: f32[4,256], index: 0, kind: input, shape index: {}]   ;;  %s167_s1 = inlined_call_operand.hbm [shape: f32[4,256], index: 1, kind: output, shape index: {}]  }
   0x1   :  { %7 = vsyncpa [#allocation4], 0  ;;  %s129_s6 = smov [#allocation2]   ;;  %s81_s10 = scalar_lea.hbm %s166_s0, 128 }
   0x2   :  { %s14_s7 = sshll.u32 %s129_s6, 4  ;;  %p82_p0 = scmp.ne.s32.totalorder %s166_s0, %s81_s10  ;;  %s15_s7 = int_to_ptr.vmem [resolvable:$true] %s14_s7 }
   0x3   :  { %p85_p1 = scmp.lt.u32.totalorder %s81_s10, %s166_s0 }
   0x5   :  { %p87_p2 = pnand %p85_p1, %p82_p0 }
   0x7   :  { %90 = shalt.err (!%p87_p2)
}
   0x8   :  { %s91_s15 = scalar_lea.vmem %s15_s7, 128  ;;  %p96_p4 = scmp.lt.s32.totalorder %s15_s7, %s15_s7 }
   0x9   :  { %p92_p3 = scmp.ne.s32.totalorder %s15_s7, %s91_s15  ;;  %p97_p5 = scmp.lt.s32.totalorder %s91_s15, %s91_s15 }
   0xb   :  { %p98_p6 = por %p97_p5, %p96_p4 }
   0xd   :  { %p99_p7 = pnand %p98_p6, %p92_p3 }
   0xf   :  { %102 = shalt.err (!%p99_p7)
}
  0x10   :  { %17 = dma.hbm_to_vmem [thread:$0]  %s166_s0, 128, %s15_s7, [#allocation3]  }
  0x11   :  { %125 = dma.done.wait [#allocation3], 128  }
  0x12   :  { %126 = vsyncadd [#allocation3], 4294967168  ;;  %vm25_vm0 = vcmask 1043456   ;;  %v21_v0 = vld [vmem:[#allocation2] sm:$0xff]  ;;  %v130_v9 = vmov 839922192   ;;  %v43_v11 = vlaneseq }
  0x13   :  { %v23_v1 = vcombine.high %v21_v0, %v21_v0  ;;  %v26_v2 = vsel %vm25_vm0, %v21_v0, inf  ;;  %v31_v4 = vsel %vm25_vm0, %v21_v0, -inf  ;;  %v41_v10 = vunpack.c.l.s4 %v130_v9  ;;  %s131_s0 = smov [#allocation5]  }
  0x14   :  { %v44_v16 = vshrl.u32 %v43_v11, 7  ;;  %s66_s18 = sshll.u32 %s131_s0, 4  ;;  %s67_s18 = int_to_ptr.vmem [resolvable:$true] %s66_s18 }
  0x15   :  { %v27_v3 = vsel %vm25_vm0, %v23_v1, inf  ;;  %v32_v5 = vsel %vm25_vm0, %v23_v1, -inf  ;;  %v42_v15 = vunpack.c.0.s8 %v41_v10  ;;  %s103_s19 = scalar_lea.vmem %s67_s18, 128  ;;  %p108_p9 = scmp.lt.s32.totalorder %s67_s18, %s67_s18 }
  0x16   :  { %v28_v6 = vmin.f32 %v26_v2, %v27_v3  ;;  %v33_v7 = vmax.f32 %v31_v4, %v32_v5  ;;  %p104_p8 = scmp.ne.s32.totalorder %s67_s18, %s103_s19  ;;  %p109_p10 = scmp.lt.s32.totalorder %s103_s19, %s103_s19 }
  0x17   :  { %v45_v17 = vsub.s32 %v42_v15, %v44_v16 }
  0x18   :  { %29 = vmin.xlane.f32.xlu0 %v28_v6  ;;  %p110_p11 = por %p109_p10, %p108_p9 }
  0x1a   :  { %p111_p12 = pnand %p110_p11, %p104_p8 }
  0x1c   :  { %34 = vmax.xlane.f32.xlu0 %v33_v7 }
  0xa5   :  { %v30_v8 = vpop.xlane.xlu0 %29 }
  0xa6   :  { %v46_v18 = vrot.slane %v30_v8, %v45_v17 }
  0xa8   :  { %v48_v20 = vsub.f32 %v21_v0, %v46_v18 }
  0xa9   :  { %v35_v12 = vpop.xlane.xlu0 %34 }
  0xaa   :  { %v36_v13 = vsub.f32 %v35_v12, %v30_v8 }
  0xac   :  { %v37_v14 = vadd.f32 1e-06, %v36_v13 }
  0xae   :  { %79 = vrcp.f32 %v37_v14 }
  0xb8   :  { %v80_v19 = vpop.eup %79 }
  0xb9   :  { %v56_v21 = vrot.slane %v80_v19, %v45_v17 }
  0xbb   :  { %v58_v22 = vmul.f32 %v56_v21, %v48_v20 }
  0xbd   :  { %59 = vst [vmem:[#allocation5] sm:$0xff] %v58_v22 }
  0xbe   :  { %114 = shalt.err (!%p111_p12)
}
  0xbf   :  { %s115_s22 = scalar_lea.hbm %s167_s1, 128 }
  0xc0   :  { %p116_p13 = scmp.ne.s32.totalorder %s167_s1, %s115_s22  ;;  %p119_p0 = scmp.lt.u32.totalorder %s115_s22, %s167_s1 }
  0xc2   :  { %p121_p1 = pnand %p119_p0, %p116_p13 }
  0xc4   :  { %124 = shalt.err (!%p121_p1)
}
  0xc5   :  { %69 = dma.vmem_to_hbm [thread:$0]  %s67_s18, 128, %s167_s1, [#allocation4]  }
  0xc6   :  { %127 = dma.done.wait [#allocation4], 128  }
  0xc7   :  { %128 = vsyncadd [#allocation4], 4294967168 }
  0xc8   :  { %73 = vsyncpa [#allocation3], 1 }
  0xc9   :  { %74 = vsyncpa [#allocation4], 1 }

</bundles_post_ra>
